<compile_context>
chip_gen: v7x
topology: tpu7x:2x2x1
jax: 0.10.0
libtpu: 0.0.40
codegen_flags: <defaults>
</compile_context>

<pallas_src>
import functools

import jax
import jax.numpy as jnp
from jax.experimental import pallas as pl
from jax.experimental.pallas import tpu as pltpu


def _lane_reduce(x, agg):
    """Reduce the last (lane) axis, keepdims, accumulating in f32."""
    x = x.astype(jnp.float32)
    if agg == "mean":
        return jnp.mean(x, axis=-1, keepdims=True)
    if agg == "max":
        return jnp.max(x, axis=-1, keepdims=True)
    if agg == "sum":
        return jnp.sum(x, axis=-1, keepdims=True)
    raise NotImplementedError(f"Aggregation {agg} not implemented.")


def _nppool_kernel(*refs, n_inputs, agg):
    """refs = (w0, b0, w1, b1, ..., out).

    w_i : (B*C, R_i * Cin_i)  lane-dense
    b_i : (B*C, R_i)          lane-dense
    out : (B*C, n_inputs)     one pooled scalar per input per (batch, channel)
    """
    in_refs = refs[:n_inputs]
    out_ref = refs[n_inputs]
    bc, nfeat = out_ref.shape

    # Build the packed output row with one-hot lane selects so the final write
    # is a single store.
    lane = jax.lax.broadcasted_iota(jnp.int32, (bc, nfeat), 1)
    acc = jnp.zeros((bc, nfeat), jnp.float32)
    for idx, ref in enumerate(in_refs):
        col = _lane_reduce(ref[...], agg)               # (bc, 1) f32
        acc = acc + jnp.where(lane == idx, col, 0.0)
    out_ref[...] = acc.astype(out_ref.dtype)


def np_pool(wsfeat, agg="mean"):
    """wsfeat: list of (weight, bias); weight (B,C,R,Cin), bias (B,C,R)."""
    n_layers = len(wsfeat)
    B, C = wsfeat[0][0].shape[:2]
    BC = B * C
    dtype = wsfeat[0][0].dtype

    # Wrapper-side layout plumbing (no compute hoisted):
    #   weight (B,C,R,Cin) -> (B*C, R*Cin);  bias (B,C,R) -> (B*C, R)
    # TODO(synk): conv weight specs (extra filter dims, where dim=(2,3) only
    # reduces the neuron axes) need a different layout and are not handled.
    flat_inputs = []
    for w, b in wsfeat:
        assert w.ndim == 4 and b.ndim == 3 and w.shape[:2] == (B, C)
        flat_inputs.append(w.reshape(BC, -1))
        flat_inputs.append(b.reshape(BC, -1))

    n_feats = 2 * n_layers
    kernel = functools.partial(
        _nppool_kernel, n_inputs=len(flat_inputs), agg=agg
    )

    in_bytes = sum(x.size * x.dtype.itemsize for x in flat_inputs)
    out_bytes = BC * n_feats * jnp.dtype(dtype).itemsize
    cost = pl.CostEstimate(
        flops=sum(x.size for x in flat_inputs),
        transcendentals=0,
        bytes_accessed=in_bytes + out_bytes,
    )

    # Single fused call, no grid: each (reshaped) operand is its own
    # full-array VMEM block (block shape == array shape satisfies the (8,128)
    # rule), so there is exactly one launch and no pipeline warmup.
    # For real model sizes (R*Cin in the tens of thousands) add a reduction
    # grid axis over the lane dim with an f32 VMEM accumulator scratch
    # (+ masking / correct divisor for mean/max on ragged tails), sized to
    # v7x's 64 MiB VMEM.
    out = pl.pallas_call(
        kernel,
        out_shape=jax.ShapeDtypeStruct((BC, n_feats), dtype),
        cost_estimate=cost,
        compiler_params=pltpu.CompilerParams(
            vmem_limit_bytes=32 * 1024 * 1024,
        ),
    )(*flat_inputs)

    return out.reshape(B, C, n_feats)


# ---------------------------------------------------------------------------
# Pure-JAX reference (mirrors the PyTorch NPPool.forward exactly)
# ---------------------------------------------------------------------------
def np_pool_ref(wsfeat, agg="mean"):
    if agg == "mean":
        f = lambda x, dim: jnp.mean(x, axis=dim)
    elif agg == "max":
        f = lambda x, dim: jnp.max(x, axis=dim)
    elif agg == "sum":
        f = lambda x, dim: jnp.sum(x, axis=dim)
    else:
        raise NotImplementedError(f"Aggregation {agg} not implemented.")
    out = []
    for w, b in wsfeat:
        out.append(f(w, (2, 3))[..., None])   # (B, C, 1)
        out.append(f(b, -1)[..., None])       # (B, C, 1)
    flat = [o.reshape(o.shape[0], o.shape[1], -1) for o in out]
    return jnp.concatenate(flat, axis=-1)


if __name__ == "__main__":
    # Synthetic 3-layer MLP weight space: n_in=16 -> 32 -> 32 -> n_out=8,
    # batch B=2, C=4 feature channels.
    B, C = 2, 4
    n_in, h1, h2, n_out = 16, 32, 32, 8

    key = jax.random.PRNGKey(0)
    keys = jax.random.split(key, 6)
    wsfeat = [
        (jax.random.normal(keys[0], (B, C, h1, n_in), jnp.float32),
         jax.random.normal(keys[1], (B, C, h1), jnp.float32)),
        (jax.random.normal(keys[2], (B, C, h2, h1), jnp.float32),
         jax.random.normal(keys[3], (B, C, h2), jnp.float32)),
        (jax.random.normal(keys[4], (B, C, n_out, h2), jnp.float32),
         jax.random.normal(keys[5], (B, C, n_out), jnp.float32)),
    ]

    ok = True
    for agg in ("mean", "max", "sum"):
        res = jax.block_until_ready(np_pool(wsfeat, agg=agg))
        assert res.shape == (B, C, 2 * len(wsfeat)), res.shape
        ref = np_pool_ref(wsfeat, agg=agg)
        if not jnp.allclose(res, ref, atol=1e-4, rtol=1e-4):
            ok = False
            print(f"MISMATCH for agg={agg}")

    if ok:
        print("KERNEL_OK")
</pallas_src>

<mosaic_0001>
module attributes {stable_mosaic.version = 11 : i64} {
  func.func @_nppool_kernel(%arg0: memref<8x512xf32, #tpu.memory_space<vmem>>, %arg1: memref<8x32xf32, #tpu.memory_space<vmem>>, %arg2: memref<8x1024xf32, #tpu.memory_space<vmem>>, %arg3: memref<8x32xf32, #tpu.memory_space<vmem>>, %arg4: memref<8x256xf32, #tpu.memory_space<vmem>>, %arg5: memref<8x8xf32, #tpu.memory_space<vmem>>, %arg6: memref<8x6xf32, #tpu.memory_space<vmem>>) attributes {dimension_semantics = [], scalar_prefetch = 0 : i64, scratch_operands = 0 : i64, tpu.core_type = #tpu.core_type<tc>} {
    %0 = tpu.iota {dimensions = array<i32: 1>} : vector<8x6xi32>
    %cst = arith.constant 0.000000e+00 : f32
    %1 = vector.broadcast %cst : f32 to vector<8x6xf32>
    %c0 = arith.constant 0 : index
    %c0_0 = arith.constant 0 : index
    %2 = vector.load %arg0[%c0, %c0_0] : memref<8x512xf32, #tpu.memory_space<vmem>>, vector<8x512xf32>
    %cst_1 = arith.constant dense<0.000000e+00> : vector<8xf32>
    %3 = vector.multi_reduction <add>, %2, %cst_1 [1] : vector<8x512xf32> to vector<8xf32>
    %4 = vector.shape_cast %3 : vector<8xf32> to vector<8x1xf32>
    %cst_2 = arith.constant 5.120000e+02 : f32
    %5 = vector.broadcast %cst_2 : f32 to vector<8x1xf32>
    %6 = arith.divf %4, %5 : vector<8x1xf32>
    %c0_i32 = arith.constant 0 : i32
    %7 = vector.broadcast %c0_i32 : i32 to vector<8x6xi32>
    %8 = arith.cmpi eq, %0, %7 : vector<8x6xi32>
    %cst_3 = arith.constant 0.000000e+00 : f32
    %9 = vector.shape_cast %6 : vector<8x1xf32> to vector<8x1xf32>
    %10 = vector.broadcast %9 : vector<8x1xf32> to vector<8x6xf32>
    %11 = vector.broadcast %cst_3 : f32 to vector<8x6xf32>
    %12 = arith.select %8, %10, %11 : vector<8x6xi1>, vector<8x6xf32>
    %13 = arith.addf %1, %12 : vector<8x6xf32>
    %c0_4 = arith.constant 0 : index
    %c0_5 = arith.constant 0 : index
    %14 = vector.load %arg1[%c0_4, %c0_5] : memref<8x32xf32, #tpu.memory_space<vmem>>, vector<8x32xf32>
    %cst_6 = arith.constant dense<0.000000e+00> : vector<8xf32>
    %15 = vector.multi_reduction <add>, %14, %cst_6 [1] : vector<8x32xf32> to vector<8xf32>
    %16 = vector.shape_cast %15 : vector<8xf32> to vector<8x1xf32>
    %cst_7 = arith.constant 3.200000e+01 : f32
    %17 = vector.broadcast %cst_7 : f32 to vector<8x1xf32>
    %18 = arith.divf %16, %17 : vector<8x1xf32>
    %c1_i32 = arith.constant 1 : i32
    %19 = vector.broadcast %c1_i32 : i32 to vector<8x6xi32>
    %20 = arith.cmpi eq, %0, %19 : vector<8x6xi32>
    %cst_8 = arith.constant 0.000000e+00 : f32
    %21 = vector.shape_cast %18 : vector<8x1xf32> to vector<8x1xf32>
    %22 = vector.broadcast %21 : vector<8x1xf32> to vector<8x6xf32>
    %23 = vector.broadcast %cst_8 : f32 to vector<8x6xf32>
    %24 = arith.select %20, %22, %23 : vector<8x6xi1>, vector<8x6xf32>
    %25 = arith.addf %13, %24 : vector<8x6xf32>
    %c0_9 = arith.constant 0 : index
    %c0_10 = arith.constant 0 : index
    %26 = vector.load %arg2[%c0_9, %c0_10] : memref<8x1024xf32, #tpu.memory_space<vmem>>, vector<8x1024xf32>
    %cst_11 = arith.constant dense<0.000000e+00> : vector<8xf32>
    %27 = vector.multi_reduction <add>, %26, %cst_11 [1] : vector<8x1024xf32> to vector<8xf32>
    %28 = vector.shape_cast %27 : vector<8xf32> to vector<8x1xf32>
    %cst_12 = arith.constant 1.024000e+03 : f32
    %29 = vector.broadcast %cst_12 : f32 to vector<8x1xf32>
    %30 = arith.divf %28, %29 : vector<8x1xf32>
    %c2_i32 = arith.constant 2 : i32
    %31 = vector.broadcast %c2_i32 : i32 to vector<8x6xi32>
    %32 = arith.cmpi eq, %0, %31 : vector<8x6xi32>
    %cst_13 = arith.constant 0.000000e+00 : f32
    %33 = vector.shape_cast %30 : vector<8x1xf32> to vector<8x1xf32>
    %34 = vector.broadcast %33 : vector<8x1xf32> to vector<8x6xf32>
    %35 = vector.broadcast %cst_13 : f32 to vector<8x6xf32>
    %36 = arith.select %32, %34, %35 : vector<8x6xi1>, vector<8x6xf32>
    %37 = arith.addf %25, %36 : vector<8x6xf32>
    %c0_14 = arith.constant 0 : index
    %c0_15 = arith.constant 0 : index
    %38 = vector.load %arg3[%c0_14, %c0_15] : memref<8x32xf32, #tpu.memory_space<vmem>>, vector<8x32xf32>
    %cst_16 = arith.constant dense<0.000000e+00> : vector<8xf32>
    %39 = vector.multi_reduction <add>, %38, %cst_16 [1] : vector<8x32xf32> to vector<8xf32>
    %40 = vector.shape_cast %39 : vector<8xf32> to vector<8x1xf32>
    %cst_17 = arith.constant 3.200000e+01 : f32
    %41 = vector.broadcast %cst_17 : f32 to vector<8x1xf32>
    %42 = arith.divf %40, %41 : vector<8x1xf32>
    %c3_i32 = arith.constant 3 : i32
    %43 = vector.broadcast %c3_i32 : i32 to vector<8x6xi32>
    %44 = arith.cmpi eq, %0, %43 : vector<8x6xi32>
    %cst_18 = arith.constant 0.000000e+00 : f32
    %45 = vector.shape_cast %42 : vector<8x1xf32> to vector<8x1xf32>
    %46 = vector.broadcast %45 : vector<8x1xf32> to vector<8x6xf32>
    %47 = vector.broadcast %cst_18 : f32 to vector<8x6xf32>
    %48 = arith.select %44, %46, %47 : vector<8x6xi1>, vector<8x6xf32>
    %49 = arith.addf %37, %48 : vector<8x6xf32>
    %c0_19 = arith.constant 0 : index
    %c0_20 = arith.constant 0 : index
    %50 = vector.load %arg4[%c0_19, %c0_20] : memref<8x256xf32, #tpu.memory_space<vmem>>, vector<8x256xf32>
    %cst_21 = arith.constant dense<0.000000e+00> : vector<8xf32>
    %51 = vector.multi_reduction <add>, %50, %cst_21 [1] : vector<8x256xf32> to vector<8xf32>
    %52 = vector.shape_cast %51 : vector<8xf32> to vector<8x1xf32>
    %cst_22 = arith.constant 2.560000e+02 : f32
    %53 = vector.broadcast %cst_22 : f32 to vector<8x1xf32>
    %54 = arith.divf %52, %53 : vector<8x1xf32>
    %c4_i32 = arith.constant 4 : i32
    %55 = vector.broadcast %c4_i32 : i32 to vector<8x6xi32>
    %56 = arith.cmpi eq, %0, %55 : vector<8x6xi32>
    %cst_23 = arith.constant 0.000000e+00 : f32
    %57 = vector.shape_cast %54 : vector<8x1xf32> to vector<8x1xf32>
    %58 = vector.broadcast %57 : vector<8x1xf32> to vector<8x6xf32>
    %59 = vector.broadcast %cst_23 : f32 to vector<8x6xf32>
    %60 = arith.select %56, %58, %59 : vector<8x6xi1>, vector<8x6xf32>
    %61 = arith.addf %49, %60 : vector<8x6xf32>
    %c0_24 = arith.constant 0 : index
    %c0_25 = arith.constant 0 : index
    %62 = vector.load %arg5[%c0_24, %c0_25] : memref<8x8xf32, #tpu.memory_space<vmem>>, vector<8x8xf32>
    %cst_26 = arith.constant dense<0.000000e+00> : vector<8xf32>
    %63 = vector.multi_reduction <add>, %62, %cst_26 [1] : vector<8x8xf32> to vector<8xf32>
    %64 = vector.shape_cast %63 : vector<8xf32> to vector<8x1xf32>
    %cst_27 = arith.constant 8.000000e+00 : f32
    %65 = vector.broadcast %cst_27 : f32 to vector<8x1xf32>
    %66 = arith.divf %64, %65 : vector<8x1xf32>
    %c5_i32 = arith.constant 5 : i32
    %67 = vector.broadcast %c5_i32 : i32 to vector<8x6xi32>
    %68 = arith.cmpi eq, %0, %67 : vector<8x6xi32>
    %cst_28 = arith.constant 0.000000e+00 : f32
    %69 = vector.shape_cast %66 : vector<8x1xf32> to vector<8x1xf32>
    %70 = vector.broadcast %69 : vector<8x1xf32> to vector<8x6xf32>
    %71 = vector.broadcast %cst_28 : f32 to vector<8x6xf32>
    %72 = arith.select %68, %70, %71 : vector<8x6xi1>, vector<8x6xf32>
    %73 = arith.addf %61, %72 : vector<8x6xf32>
    %c0_29 = arith.constant 0 : index
    %c0_30 = arith.constant 0 : index
    %74 = vector.load %arg6[%c0_29, %c0_30] : memref<8x6xf32, #tpu.memory_space<vmem>>, vector<8x6xf32>
    tpu.vector_store %arg6[%c0_29, %c0_30], %73 {strides = array<i32>} : memref<8x6xf32, #tpu.memory_space<vmem>>, vector<8x6xf32>,
    return
  }
}

</mosaic_0001>

<bundles_post_ra>
// kernel: tpu_custom_call.1
= control target key start
LH: loop header
LB: loop body
LE: loop exit
PB: predicated region body
PF: predicated region fallthrough
CT: control target
= control target key end

     0   :  { %11 = vsyncpa [#allocation3], 0  ;;  %s397_s0 = inlined_call_operand.hbm [shape: f32[8,512], index: 0, kind: input, shape index: {}]   ;;  %s398_s1 = inlined_call_operand.hbm [shape: f32[8,32], index: 1, kind: input, shape index: {}]   ;;  %s399_s2 = inlined_call_operand.hbm [shape: f32[8,1024], index: 2, kind: input, shape index: {}]   ;;  %s400_s3 = inlined_call_operand.vmem [shape: f32[8,32], index: 3, kind: input, shape index: {}]   ;;  %s401_s4 = inlined_call_operand.hbm [shape: f32[8,256], index: 4, kind: input, shape index: {}]   ;;  %s402_s5 = inlined_call_operand.vmem [shape: f32[8,8], index: 5, kind: input, shape index: {}]   ;;  %s403_s6 = inlined_call_operand.hbm [shape: f32[8,6], index: 6, kind: output, shape index: {}]  }
   0x1   :  { %12 = vsyncpa [#allocation6], 0 }
   0x2   :  { %13 = vsyncpa [#allocation9], 0 }
   0x3   :  { %14 = vsyncpa [#allocation4], 0  ;;  %s289_s21 = smov [#allocation5]   ;;  %s290_s23 = smov [#allocation2]  }
   0x4   :  { %s31_s22 = sshll.u32 %s289_s21, 4  ;;  %s21_s24 = sshll.u32 %s290_s23, 4  ;;  %s32_s22 = int_to_ptr.vmem [resolvable:$true] %s31_s22  ;;  %s22_s24 = int_to_ptr.vmem [resolvable:$true] %s21_s24 }
   0x5   :  { %s171_s27 = scalar_lea.hbm %s398_s1, 128 }
   0x6   :  { %p172_p0 = scmp.ne.s32.totalorder %s398_s1, %s171_s27  ;;  %p175_p1 = scmp.lt.u32.totalorder %s171_s27, %s398_s1 }
   0x8   :  { %p177_p2 = pnand %p175_p1, %p172_p0 }
   0xa   :  { %180 = shalt.err (!%p177_p2)
}
   0xb   :  { %s181_s8 = scalar_lea.vmem %s32_s22, 128  ;;  %p186_p4 = scmp.lt.s32.totalorder %s32_s22, %s32_s22 }
   0xc   :  { %p182_p3 = scmp.ne.s32.totalorder %s32_s22, %s181_s8  ;;  %p187_p5 = scmp.lt.s32.totalorder %s181_s8, %s181_s8 }
   0xe   :  { %p188_p6 = por %p187_p5, %p186_p4 }
  0x10   :  { %p189_p7 = pnand %p188_p6, %p182_p3 }
  0x12   :  { %192 = shalt.err (!%p189_p7)
}
  0x13   :  { %34 = dma.hbm_to_vmem [thread:$0]  %s398_s1, 128, %s32_s22, [#allocation6]  }
  0x14   :  { %s193_s13 = scalar_lea.hbm %s397_s0, 512 }
  0x15   :  { %p194_p8 = scmp.ne.s32.totalorder %s397_s0, %s193_s13  ;;  %p197_p9 = scmp.lt.u32.totalorder %s193_s13, %s397_s0 }
  0x17   :  { %p199_p10 = pnand %p197_p9, %p194_p8 }
  0x19   :  { %202 = shalt.err (!%p199_p10)
}
  0x1a   :  { %s203_s18 = scalar_lea.vmem %s22_s24, 512  ;;  %p208_p12 = scmp.lt.s32.totalorder %s22_s24, %s22_s24 }
  0x1b   :  { %p204_p11 = scmp.ne.s32.totalorder %s22_s24, %s203_s18  ;;  %p209_p13 = scmp.lt.s32.totalorder %s203_s18, %s203_s18 }
  0x1d   :  { %p210_p0 = por %p209_p13, %p208_p12 }
  0x1f   :  { %p211_p1 = pnand %p210_p0, %p204_p11 }
  0x21   :  { %214 = shalt.err (!%p211_p1)
}
  0x22   :  { %24 = dma.hbm_to_vmem [thread:$0]  %s397_s0, 512, %s22_s24, [#allocation3]  }
  0x23   :  { %s291_s20 = smov [#allocation7]   ;;  %s292_s22 = smov [#allocation8]  }
  0x24   :  { %s41_s21 = sshll.u32 %s291_s20, 4  ;;  %s53_s23 = sshll.u32 %s292_s22, 4  ;;  %s42_s21 = int_to_ptr.vmem [resolvable:$true] %s41_s21  ;;  %s54_s23 = int_to_ptr.vmem [resolvable:$true] %s53_s23 }
  0x25   :  { %s215_s27 = scalar_lea.hbm %s399_s2, 1024 }
  0x26   :  { %p216_p2 = scmp.ne.s32.totalorder %s399_s2, %s215_s27  ;;  %p219_p3 = scmp.lt.u32.totalorder %s215_s27, %s399_s2 }
  0x28   :  { %p221_p4 = pnand %p219_p3, %p216_p2 }
  0x2a   :  { %224 = shalt.err (!%p221_p4)
}
  0x2b   :  { %s225_s0 = scalar_lea.vmem %s42_s21, 1024  ;;  %p230_p6 = scmp.lt.s32.totalorder %s42_s21, %s42_s21 }
  0x2c   :  { %p226_p5 = scmp.ne.s32.totalorder %s42_s21, %s225_s0  ;;  %p231_p7 = scmp.lt.s32.totalorder %s225_s0, %s225_s0 }
  0x2e   :  { %p232_p8 = por %p231_p7, %p230_p6 }
  0x30   :  { %p233_p9 = pnand %p232_p8, %p226_p5 }
  0x32   :  { %236 = shalt.err (!%p233_p9)
}
  0x33   :  { %44 = dma.hbm_to_vmem [thread:$0]  %s399_s2, 1024, %s42_s21, [#allocation6]  }
  0x34   :  { %s237_s11 = scalar_lea.hbm %s401_s4, 256 }
  0x35   :  { %p238_p10 = scmp.ne.s32.totalorder %s401_s4, %s237_s11  ;;  %p241_p11 = scmp.lt.u32.totalorder %s237_s11, %s401_s4 }
  0x37   :  { %p243_p12 = pnand %p241_p11, %p238_p10 }
  0x39   :  { %246 = shalt.err (!%p243_p12)
}
  0x3a   :  { %s247_s16 = scalar_lea.vmem %s54_s23, 256  ;;  %p252_p0 = scmp.lt.s32.totalorder %s54_s23, %s54_s23 }
  0x3b   :  { %p248_p13 = scmp.ne.s32.totalorder %s54_s23, %s247_s16  ;;  %p253_p1 = scmp.lt.s32.totalorder %s247_s16, %s247_s16 }
  0x3d   :  { %p254_p2 = por %p253_p1, %p252_p0 }
  0x3f   :  { %p255_p3 = pnand %p254_p2, %p248_p13 }
  0x41   :  { %258 = shalt.err (!%p255_p3)
}
  0x42   :  { %56 = dma.hbm_to_vmem [thread:$0]  %s401_s4, 256, %s54_s23, [#allocation9]  }
  0x43   :  { %281 = dma.done.wait [#allocation3], 512  }
  0x44   :  { %282 = vsyncadd [#allocation3], 4294966784 }
  0x45   :  { %283 = dma.done.wait [#allocation6], 1152  }
  0x46   :  { %284 = vsyncadd [#allocation6], 4294966144 }
  0x47   :  { %285 = dma.done.wait [#allocation9], 256  }
  0x48   :  { %286 = vsyncadd [#allocation9], 4294967040  ;;  %v73_v0 = vld [vmem:[#allocation2] sm:$0xff]  ;;  %v74_v1 = vld [vmem:[#allocation2 + $0x8] sm:$0xff]  ;;  %vm88_vm0 = vcmask 261120   ;;  %vm138_vm1 = vcmask 64512   ;;  %v71_v31 = vlaneseq }
  0x49   :  { %v75_v2 = vld [vmem:[#allocation2 + $0x10] sm:$0xff]  ;;  %v77_v3 = vadd.f32 %v74_v1, %v73_v0  ;;  %v97_v4 = vld [vmem:[#allocation7] sm:$0xff]  ;;  %v76_v5 = vld [vmem:[#allocation2 + $0x18] sm:$0xff]  ;;  %vm147_vm8 = vcmask 48128  }
  0x4a   :  { %v98_v6 = vld [vmem:[#allocation7 + $0x8] sm:$0xff]  ;;  %v99_v7 = vld [vmem:[#allocation7 + $0x10] sm:$0xff]  ;;  %v100_v10 = vld [vmem:[#allocation7 + $0x18] sm:$0xff]  ;;  %v72_v33 = vand.u32 127, %v71_v31 }
  0x4b   :  { %v78_v8 = vadd.f32 %v77_v3, %v75_v2  ;;  %v105_v9 = vadd.f32 %v98_v6, %v97_v4  ;;  %v87_v12 = vld [vmem:[#allocation5] sm:$0xff]  ;;  %v101_v14 = vld [vmem:[#allocation7 + $0x20] sm:$0xff]  ;;  %v102_v17 = vld [vmem:[#allocation7 + $0x28] sm:$0xff] }
  0x4c   :  { %v89_v16 = vsel %vm88_vm0, %v87_v12, 0.0  ;;  %v127_v18 = vld [vmem:[#allocation8] sm:$0xff]  ;;  %v128_v19 = vld [vmem:[#allocation8 + $0x8] sm:$0xff]  ;;  %v103_v21 = vld [vmem:[#allocation7 + $0x30] sm:$0xff]  ;;  %vm84_vm2 = vcmp.eq.s32.totalorder %v72_v33, 0  ;;  %vm94_vm3 = vcmp.eq.s32.totalorder %v72_v33, 1 }
  0x4d   :  { %v79_v11 = vadd.f32 %v78_v8, %v76_v5  ;;  %v106_v13 = vadd.f32 %v105_v9, %v99_v7  ;;  %v129_v23 = vadd.f32 %v128_v19, %v127_v18  ;;  %v104_v24 = vld [vmem:[#allocation7 + $0x38] sm:$0xff]  ;;  %vm116_vm4 = vcmp.eq.s32.totalorder %v72_v33, 2 }
  0x4e   :  { %v119_v27 = vld [vmem:[%s400_s3] sm:$0xff]  ;;  %vm124_vm5 = vcmp.eq.s32.totalorder %v72_v33, 3  ;;  %vm134_vm6 = vcmp.eq.s32.totalorder %v72_v33, 4  ;;  %vm144_vm7 = vcmp.eq.s32.totalorder %v72_v33, 5  ;;  %s293_s3 = smov [#allocation10]  }
  0x4f   :  { %80 = vadd.xlane.f32.xlu0 %v79_v11  ;;  %v107_v15 = vadd.f32 %v106_v13, %v100_v10  ;;  %v120_v28 = vsel %vm88_vm0, %v119_v27, 0.0  ;;  %v137_v29 = vld [vmem:[%s402_s5] sm:$0xff]  ;;  %s155_s5 = sshll.u32 %s293_s3, 4  ;;  %s156_s5 = int_to_ptr.vmem [resolvable:$true] %s155_s5 }
  0x50   :  { %v139_v30 = vsel %vm138_vm1, %v137_v29, 0.0  ;;  %s259_s20 = scalar_lea.vmem %s156_s5, 128  ;;  %p264_p5 = scmp.lt.s32.totalorder %s156_s5, %s156_s5 }
  0x51   :  { %v108_v20 = vadd.f32 %v107_v15, %v101_v14  ;;  %p260_p4 = scmp.ne.s32.totalorder %s156_s5, %s259_s20  ;;  %p265_p6 = scmp.lt.s32.totalorder %s259_s20, %s259_s20 }
  0x53   :  { %90 = vadd.xlane.f32.xlu0 %v89_v16  ;;  %v109_v22 = vadd.f32 %v108_v20, %v102_v17  ;;  %p266_p7 = por %p265_p6, %p264_p5 }
  0x55   :  { %v110_v25 = vadd.f32 %v109_v22, %v103_v21  ;;  %p267_p8 = pnand %p266_p7, %p260_p4 }
  0x57   :  { %v111_v26 = vadd.f32 %v110_v25, %v104_v24  ;;  %130 = vadd.xlane.f32.xlu0 %v129_v23 }
  0x59   :  { %112 = vadd.xlane.f32.xlu1 %v111_v26 }
  0x5d   :  { %121 = vadd.xlane.f32.xlu1 %v120_v28 }
  0x61   :  { %140 = vadd.xlane.f32.xlu1 %v139_v30 }
  0xdc   :  { %v81_v32 = vpop.xlane.xlu0 %80 }
  0xdd   :  { %v83_v35 = vmul.f32 0.001953125, %v81_v32 }
  0xdf   :  { %v85_v39 = vsel %vm84_vm2, %v83_v35, 0.0 }
  0xe0   :  { %v91_v34 = vpop.xlane.xlu0 %90 }
  0xe1   :  { %v93_v36 = vmul.f32 0.03125, %v91_v34 }
  0xe3   :  { %v95_v40 = vsel %vm94_vm3, %v93_v36, 0.0 }
  0xe4   :  { %v131_v38 = vpop.xlane.xlu0 %130  ;;  %v96_v44 = vadd.f32 %v95_v40, %v85_v39 }
  0xe5   :  { %v133_v43 = vmul.f32 0.00390625, %v131_v38 }
  0xe6   :  { %v113_v37 = vpop.xlane.xlu1 %112 }
  0xe7   :  { %v115_v41 = vmul.f32 0.0009765625, %v113_v37  ;;  %v135_v49 = vsel %vm134_vm6, %v133_v43, 0.0 }
  0xe9   :  { %v117_v42 = vsel %vm116_vm4, %v115_v41, 0.0 }
  0xea   :  { %v122_v45 = vpop.xlane.xlu1 %121  ;;  %v118_v47 = vadd.f32 %v117_v42, %v96_v44 }
  0xeb   :  { %v123_v46 = vmul.f32 0.03125, %v122_v45 }
  0xed   :  { %v125_v48 = vsel %vm124_vm5, %v123_v46, 0.0 }
  0xee   :  { %v126_v50 = vadd.f32 %v125_v48, %v118_v47  ;;  %v141_v51 = vpop.xlane.xlu1 %140 }
  0xef   :  { %v143_v52 = vmul.f32 0.125, %v141_v51 }
  0xf0   :  { %v136_v53 = vadd.f32 %v135_v49, %v126_v50 }
  0xf1   :  { %v145_v54 = vsel %vm144_vm7, %v143_v52, 0.0 }
  0xf2   :  { %v146_v55 = vadd.f32 %v145_v54, %v136_v53 }
  0xf4   :  { %148 = vst.msk [vmem:[#allocation10] sm:$0xff] %vm147_vm8, %v146_v55 }
  0xf5   :  { %270 = shalt.err (!%p267_p8)
}
  0xf6   :  { %s271_s23 = scalar_lea.hbm %s403_s6, 128 }
  0xf7   :  { %p272_p9 = scmp.ne.s32.totalorder %s403_s6, %s271_s23  ;;  %p275_p10 = scmp.lt.u32.totalorder %s271_s23, %s403_s6 }
  0xf9   :  { %p277_p11 = pnand %p275_p10, %p272_p9 }
  0xfb   :  { %280 = shalt.err (!%p277_p11)
}
  0xfc   :  { %158 = dma.vmem_to_hbm [thread:$0]  %s156_s5, 128, %s403_s6, [#allocation4]  }
  0xfd   :  { %287 = dma.done.wait [#allocation4], 128  }
  0xfe   :  { %288 = vsyncadd [#allocation4], 4294967168 }
  0xff   :  { %162 = vsyncpa [#allocation3], 1 }
 0x100   :  { %163 = vsyncpa [#allocation6], 1 }
 0x101   :  { %164 = vsyncpa [#allocation9], 1 }
 0x102   :  { %165 = vsyncpa [#allocation4], 1 }

</bundles_post_ra>
